<compile_context>
chip_gen: v7x
topology: tpu7x:2x2x1
jax: 0.10.0
libtpu: 0.0.40
codegen_flags: <defaults>
</compile_context>

<pallas_src>
import functools
import math

import jax
import jax.numpy as jnp
from jax.experimental import pallas as pl
from jax.experimental.pallas import tpu as pltpu

LOG_2PI = math.log(2.0 * math.pi)
LANE = 128
SUBLANE = 8


def _round_up(x, m):
    return ((x + m - 1) // m) * m


def _gaussian_kernel(feat_ref, match_ref, wcat_ref, out_ref, *, d_pad):
    feat = feat_ref[...]                                   # (TB, Din)
    # Single fused MXU matmul producing [mu | logSigmaSq] side by side.
    proj = jnp.dot(feat, wcat_ref[...], preferred_element_type=jnp.float32)
    mu = proj[:, :d_pad]                                   # lane-aligned split
    log_sigma_sq = proj[:, d_pad:]

    sigma_sq = jnp.exp(log_sigma_sq)                       # EUP #1

    # softplus(x) = log1p(exp(x)) -- reuse sigma_sq (saves one EUP exp).
    # For x > 30, softplus(x) == x to f32 precision; the where() also guards
    # against log1p(inf) when exp(x) overflows.
    softplus = jnp.where(log_sigma_sq > 30.0,
                         log_sigma_sq,
                         jnp.log1p(sigma_sq))              # EUP #2

    # Clamp keeps t finite so the Newton step below can never produce NaN
    # (inf * 0) even if exp() overflowed; matches the reference limit of 0.
    t = jnp.minimum(sigma_sq, jnp.float32(3.0e38)) + 1.0
    inv = pl.reciprocal(t, approx=True)                    # EUP #3 (vrcp)
    inv = inv * (2.0 - t * inv)                            # 1 NR step on the VPU

    diff = match_ref[...] - mu
    out_ref[...] = (-0.5 * (diff * diff * inv + softplus + LOG_2PI)).astype(
        out_ref.dtype)


def prepare_weights(w_mu, w_sigma):
    """One-time weight prep (hoisted out of the per-call hot path).

    PyTorch Linear stores weight as [Dout, Din]; transpose to [Din, Dout],
    zero-pad Dout up to a lane multiple (128) so the in-kernel mu/logSigmaSq
    split is lane-aligned, and concatenate along the output axis.
    Returns (w_cat [Din, 2*d_pad], d_out, d_pad).
    """
    d_out, d_in = w_mu.shape
    assert w_sigma.shape == (d_out, d_in)
    d_pad = _round_up(d_out, LANE)
    w_mu_t = jnp.zeros((d_in, d_pad), jnp.float32).at[:, :d_out].set(
        jnp.asarray(w_mu, jnp.float32).T)
    w_sigma_t = jnp.zeros((d_in, d_pad), jnp.float32).at[:, :d_out].set(
        jnp.asarray(w_sigma, jnp.float32).T)
    w_cat = jnp.concatenate([w_mu_t, w_sigma_t], axis=1)
    return w_cat, d_out, d_pad


def _vmem_budget():
    """Generation-aware VMEM limits: (vmem_limit_bytes, working_set_budget)."""
    try:
        vmem_cap = pltpu.get_tpu_info().vmem_capacity_bytes
    except Exception:
        vmem_cap = 64 * 1024 * 1024      # conservative fallback (v7x per-TC)
    # Leave headroom for compiler-internal scratch: never request the full
    # physical VMEM (critical on v7x where it is only 64 MiB per TC).
    vmem_limit = min((vmem_cap * 3) // 4, 100 * 1024 * 1024)
    budget = (vmem_limit * 2) // 3       # ceiling for our accounted working set
    return vmem_cap, vmem_limit, budget


def gaussian_transform(feature_vec, match_vec, w_cat, d_out, d_pad):
    """feature_vec: [B, Din], match_vec: [B, Dout],
    w_cat / d_out / d_pad: from prepare_weights()."""
    B, d_in = feature_vec.shape
    assert match_vec.shape == (B, d_out)
    assert w_cat.shape == (d_in, 2 * d_pad)

    feat = jnp.asarray(feature_vec, jnp.float32)
    match = jnp.asarray(match_vec, jnp.float32)

    # No batch padding: Pallas masks the partial last batch block.  Column pad
    # of match is only needed when d_out is not already a lane multiple.
    if d_pad != d_out:
        match = jnp.pad(match, ((0, 0), (0, d_pad - d_out)))

    vmem_cap, vmem_limit, budget = _vmem_budget()

    # VMEM accounting (bytes):
    #  * weights are resident (constant block index) but the default pipeliner
    #    still double-buffers them -> count twice.
    #  * per batch tile: feat + match + out tiles double-buffered, plus the
    #    single-buffered proj temporary (t x 2*d_pad).
    w_bytes = 2 * (d_in * 2 * d_pad) * 4

    def tile_bytes(t):
        return (2 * (t * d_in + 2 * t * d_pad) + 2 * t * d_pad) * 4

    # Batch tile: sublane multiple; large enough to amortize ~0.35 us/step;
    # capped so (a) the working set fits the budget and (b) the grid has >= 2
    # steps when possible so v7x's second TensorCore gets work.
    tb_cap = 2048 if vmem_cap >= 96 * 1024 * 1024 else 1024
    tb = min(tb_cap, _round_up(B, SUBLANE))
    if B >= 2 * SUBLANE:
        tb = min(tb, max(SUBLANE, (B // 2 // SUBLANE) * SUBLANE))
    while tb > SUBLANE and w_bytes + tile_bytes(tb) > budget:
        tb = max(SUBLANE, tb // 2)

    grid = (pl.cdiv(B, tb),)

    cost = pl.CostEstimate(
        flops=2 * B * d_in * (2 * d_pad) + 10 * B * d_pad,
        transcendentals=3 * B * d_pad,
        bytes_accessed=4 * (B * d_in + 2 * B * d_pad + 2 * d_in * d_pad),
    )

    kernel = functools.partial(_gaussian_kernel, d_pad=d_pad)
    out = pl.pallas_call(
        kernel,
        out_shape=jax.ShapeDtypeStruct((B, d_pad), jnp.float32),
        grid=grid,
        in_specs=[
            pl.BlockSpec((tb, d_in), lambda i: (i, 0)),
            pl.BlockSpec((tb, d_pad), lambda i: (i, 0)),
            pl.BlockSpec((d_in, 2 * d_pad), lambda i: (0, 0)),  # weights resident
        ],
        out_specs=pl.BlockSpec((tb, d_pad), lambda i: (i, 0)),
        compiler_params=pltpu.CompilerParams(
            dimension_semantics=("parallel",),   # lets v7x split batch over 2 TCs
            vmem_limit_bytes=vmem_limit,
        ),
        cost_estimate=cost,
    )(feat, match, w_cat)

    if d_pad != d_out:
        out = out[:, :d_out]
    return out


def xavier_uniform(key, shape, gain):
    # shape is (fan_out, fan_in), like torch.nn.Linear.weight
    fan_out, fan_in = shape
    bound = gain * math.sqrt(6.0 / (fan_in + fan_out))
    return jax.random.uniform(key, shape, jnp.float32, -bound, bound)


if __name__ == "__main__":
    key = jax.random.PRNGKey(0)
    k_feat, k_match, k_wmu, k_wsig = jax.random.split(key, 4)

    B, Din, Dout = 8, 32, 128

    feature_vec = jax.random.normal(k_feat, (B, Din), jnp.float32)
    match_vec = jax.random.normal(k_match, (B, Dout), jnp.float32)

    gain = 1.414
    w_mu = xavier_uniform(k_wmu, (Dout, Din), gain)      # muTrans.weight
    w_sigma = xavier_uniform(k_wsig, (Dout, Din), gain)  # sigmaTrans.weight

    # One-time weight prep (transpose + pad + concat), outside the hot path.
    w_cat, d_out, d_pad = prepare_weights(w_mu, w_sigma)

    out = gaussian_transform(feature_vec, match_vec, w_cat, d_out, d_pad)
    out = jax.block_until_ready(out)

    # Pure-JAX reference.
    mu_ref = feature_vec @ w_mu.T
    log_ss_ref = feature_vec @ w_sigma.T
    ref = -0.5 * (
        (match_vec - mu_ref) ** 2 / (jnp.exp(log_ss_ref) + 1.0)
        + jax.nn.softplus(log_ss_ref)
        + LOG_2PI
    )
    assert out.shape == (B, Dout)
    assert jnp.allclose(out, ref, atol=1e-5, rtol=1e-5)

    print("KERNEL_OK")
</pallas_src>

<mosaic_0001>
module attributes {stable_mosaic.version = 11 : i64} {
  func.func @_gaussian_kernel(%arg0: i32, %arg1: memref<8x32xf32, #tpu.memory_space<vmem>>, %arg2: memref<8x128xf32, #tpu.memory_space<vmem>>, %arg3: memref<32x256xf32, #tpu.memory_space<vmem>>, %arg4: memref<8x128xf32, #tpu.memory_space<vmem>>) attributes {dimension_semantics = [#tpu.dimension_semantics<parallel>], iteration_bounds = array<i64: 1>, scalar_prefetch = 0 : i64, scratch_operands = 0 : i64, tpu.core_type = #tpu.core_type<tc>, window_params = [{transform_indices = @transform_0, window_bounds = array<i64: 8, 32>}, {transform_indices = @transform_1, window_bounds = array<i64: 8, 128>}, {pipeline_mode = #tpu.pipeline_mode<synchronous>, transform_indices = @transform_2, window_bounds = array<i64: 32, 256>}, {transform_indices = @transform_3, window_bounds = array<i64: 8, 128>}]} {
    %c0 = arith.constant 0 : index
    %c0_0 = arith.constant 0 : index
    %0 = vector.load %arg1[%c0, %c0_0] : memref<8x32xf32, #tpu.memory_space<vmem>>, vector<8x32xf32>
    %c0_1 = arith.constant 0 : index
    %c0_2 = arith.constant 0 : index
    %1 = vector.load %arg3[%c0_1, %c0_2] : memref<32x256xf32, #tpu.memory_space<vmem>>, vector<32x256xf32>
    %cst = arith.constant dense<0.000000e+00> : vector<8x256xf32>
    %2 = tpu.matmul %0, %1, %cst {dimension_numbers = #tpu.dot_dimension_numbers<[1], [0], [0], [1], [0, 0, 1, 1], [], []>} : vector<8x32xf32>, vector<32x256xf32>, vector<8x256xf32> -> vector<8x256xf32>
    %3 = vector.extract_strided_slice %2 {offsets = [0, 0], sizes = [8, 128], strides = [1, 1]} : vector<8x256xf32> to vector<8x128xf32>
    %4 = vector.extract_strided_slice %2 {offsets = [0, 128], sizes = [8, 128], strides = [1, 1]} : vector<8x256xf32> to vector<8x128xf32>
    %5 = math.exp %4 : vector<8x128xf32>
    %cst_3 = arith.constant 3.000000e+01 : f32
    %6 = vector.broadcast %cst_3 : f32 to vector<8x128xf32>
    %7 = arith.cmpf ogt, %4, %6 : vector<8x128xf32>
    %8 = math.log1p %5 : vector<8x128xf32>
    %9 = arith.select %7, %4, %8 : vector<8x128xi1>, vector<8x128xf32>
    %cst_4 = arith.constant 3.000000e+38 : f32
    %10 = vector.broadcast %cst_4 : f32 to vector<8x128xf32>
    %11 = arith.minimumf %5, %10 : vector<8x128xf32>
    %cst_5 = arith.constant 1.000000e+00 : f32
    %12 = vector.broadcast %cst_5 : f32 to vector<8x128xf32>
    %13 = arith.addf %11, %12 : vector<8x128xf32>
    %14 = tpu.reciprocal %13 {approx = true} : vector<8x128xf32> -> vector<8x128xf32>
    %15 = arith.mulf %13, %14 : vector<8x128xf32>
    %cst_6 = arith.constant 2.000000e+00 : f32
    %16 = vector.broadcast %cst_6 : f32 to vector<8x128xf32>
    %17 = arith.subf %16, %15 : vector<8x128xf32>
    %18 = arith.mulf %14, %17 : vector<8x128xf32>
    %c0_7 = arith.constant 0 : index
    %c0_8 = arith.constant 0 : index
    %19 = vector.load %arg2[%c0_7, %c0_8] : memref<8x128xf32, #tpu.memory_space<vmem>>, vector<8x128xf32>
    %20 = arith.subf %19, %3 : vector<8x128xf32>
    %21 = arith.mulf %20, %20 : vector<8x128xf32>
    %22 = arith.mulf %21, %18 : vector<8x128xf32>
    %23 = arith.addf %22, %9 : vector<8x128xf32>
    %cst_9 = arith.constant 1.83787704 : f32
    %24 = vector.broadcast %cst_9 : f32 to vector<8x128xf32>
    %25 = arith.addf %23, %24 : vector<8x128xf32>
    %cst_10 = arith.constant -5.000000e-01 : f32
    %26 = vector.broadcast %cst_10 : f32 to vector<8x128xf32>
    %27 = arith.mulf %26, %25 : vector<8x128xf32>
    %c0_11 = arith.constant 0 : index
    %c0_12 = arith.constant 0 : index
    %28 = vector.load %arg4[%c0_11, %c0_12] : memref<8x128xf32, #tpu.memory_space<vmem>>, vector<8x128xf32>
    tpu.vector_store %arg4[%c0_11, %c0_12], %27 {strides = array<i32>} : memref<8x128xf32, #tpu.memory_space<vmem>>, vector<8x128xf32>,
    return
  }
  func.func @transform_0(%arg0: i32) -> (i32, i32) {
    %c0_i32 = arith.constant 0 : i32
    %c0_i32_0 = arith.constant 0 : i32
    return %arg0, %c0_i32 : i32, i32
  }
  func.func @transform_1(%arg0: i32) -> (i32, i32) {
    %c0_i32 = arith.constant 0 : i32
    %c0_i32_0 = arith.constant 0 : i32
    return %arg0, %c0_i32 : i32, i32
  }
  func.func @transform_2(%arg0: i32) -> (i32, i32) {
    %c0_i32 = arith.constant 0 : i32
    %c0_i32_0 = arith.constant 0 : i32
    %c0_i32_1 = arith.constant 0 : i32
    return %c0_i32, %c0_i32_0 : i32, i32
  }
  func.func @transform_3(%arg0: i32) -> (i32, i32) {
    %c0_i32 = arith.constant 0 : i32
    %c0_i32_0 = arith.constant 0 : i32
    return %arg0, %c0_i32 : i32, i32
  }
}

</mosaic_0001>

<bundles_post_ra>
// kernel: tpu_custom_call.1
= control target key start
LH: loop header
LB: loop body
LE: loop exit
PB: predicated region body
PF: predicated region fallthrough
CT: control target
= control target key end

     0   :  { %8 = vsyncpa [#allocation3], 0  ;;  %s370_s0 = inlined_call_operand.hbm [shape: f32[8,32], index: 0, kind: input, shape index: {}]   ;;  %s371_s1 = inlined_call_operand.hbm [shape: f32[8,128], index: 1, kind: input, shape index: {}]   ;;  %s372_s2 = inlined_call_operand.hbm [shape: f32[32,256], index: 2, kind: input, shape index: {}]   ;;  %s373_s3 = inlined_call_operand.hbm [shape: f32[8,128], index: 3, kind: output, shape index: {}]  }
   0x1   :  { %9 = vsyncpa [#allocation6], 0 }
   0x2   :  { %10 = vsyncpa [#allocation4], 0  ;;  %s295_s12 = smov [#allocation5]   ;;  %s296_s14 = smov [#allocation2]  }
   0x3   :  { %s27_s13 = sshll.u32 %s295_s12, 4  ;;  %s17_s15 = sshll.u32 %s296_s14, 4  ;;  %s28_s13 = int_to_ptr.vmem [resolvable:$true] %s27_s13  ;;  %s18_s15 = int_to_ptr.vmem [resolvable:$true] %s17_s15 }
   0x4   :  { %s201_s18 = scalar_lea.hbm %s371_s1, 128 }
   0x5   :  { %p202_p0 = scmp.ne.s32.totalorder %s371_s1, %s201_s18  ;;  %p205_p1 = scmp.lt.u32.totalorder %s201_s18, %s371_s1 }
   0x7   :  { %p207_p2 = pnand %p205_p1, %p202_p0 }
   0x9   :  { %210 = shalt.err (!%p207_p2)
}
   0xa   :  { %s211_s23 = scalar_lea.vmem %s28_s13, 128  ;;  %p216_p4 = scmp.lt.s32.totalorder %s28_s13, %s28_s13 }
   0xb   :  { %p212_p3 = scmp.ne.s32.totalorder %s28_s13, %s211_s23  ;;  %p217_p5 = scmp.lt.s32.totalorder %s211_s23, %s211_s23 }
   0xd   :  { %p218_p6 = por %p217_p5, %p216_p4 }
   0xf   :  { %p219_p7 = pnand %p218_p6, %p212_p3 }
  0x11   :  { %222 = shalt.err (!%p219_p7)
}
  0x12   :  { %30 = dma.hbm_to_vmem [thread:$0]  %s371_s1, 128, %s28_s13, [#allocation6]  }
  0x13   :  { %s223_s28 = scalar_lea.hbm %s370_s0, 128 }
  0x14   :  { %p224_p8 = scmp.ne.s32.totalorder %s370_s0, %s223_s28  ;;  %p227_p9 = scmp.lt.u32.totalorder %s223_s28, %s370_s0 }
  0x16   :  { %p229_p10 = pnand %p227_p9, %p224_p8 }
  0x18   :  { %232 = shalt.err (!%p229_p10)
}
  0x19   :  { %s233_s6 = scalar_lea.vmem %s18_s15, 128  ;;  %p238_p12 = scmp.lt.s32.totalorder %s18_s15, %s18_s15 }
  0x1a   :  { %p234_p11 = scmp.ne.s32.totalorder %s18_s15, %s233_s6  ;;  %p239_p13 = scmp.lt.s32.totalorder %s233_s6, %s233_s6 }
  0x1c   :  { %p240_p0 = por %p239_p13, %p238_p12 }
  0x1e   :  { %p241_p1 = pnand %p240_p0, %p234_p11 }
  0x20   :  { %244 = shalt.err (!%p241_p1)
}
  0x21   :  { %20 = dma.hbm_to_vmem [thread:$0]  %s370_s0, 128, %s18_s15, [#allocation3]  }
  0x22   :  { %s297_s8 = smov [#allocation7]   ;;  %s245_s12 = scalar_lea.hbm %s372_s2, 1024 }
  0x23   :  { %s36_s9 = sshll.u32 %s297_s8, 4  ;;  %p246_p2 = scmp.ne.s32.totalorder %s372_s2, %s245_s12  ;;  %s37_s9 = int_to_ptr.vmem [resolvable:$true] %s36_s9 }
  0x24   :  { %p249_p3 = scmp.lt.u32.totalorder %s245_s12, %s372_s2 }
  0x26   :  { %p251_p4 = pnand %p249_p3, %p246_p2 }
  0x28   :  { %254 = shalt.err (!%p251_p4)
}
  0x29   :  { %s255_s18 = scalar_lea.vmem %s37_s9, 1024  ;;  %p260_p6 = scmp.lt.s32.totalorder %s37_s9, %s37_s9 }
  0x2a   :  { %p256_p5 = scmp.ne.s32.totalorder %s37_s9, %s255_s18  ;;  %p261_p7 = scmp.lt.s32.totalorder %s255_s18, %s255_s18 }
  0x2c   :  { %p262_p8 = por %p261_p7, %p260_p6 }
  0x2e   :  { %p263_p9 = pnand %p262_p8, %p256_p5 }
  0x30   :  { %266 = shalt.err (!%p263_p9)
}
  0x31   :  { %s298_s0 = smov 256   ;;  %s299_s15 = smov 16  }
  0x32   :  { %42 = dma.hbm_to_vmem [thread:$0]  %s372_s2, 1024, %s37_s9, [#allocation6], %s298_s0, %s298_s0, %s299_s15  }
  0x33   :  { %289 = dma.done.wait [#allocation3], 128  }
  0x34   :  { %290 = vsyncadd [#allocation3], 4294967168 }
  0x35   :  { %291 = dma.done.wait [#allocation6], 1152  }
  0x36   :  { %292 = vsyncadd [#allocation6], 4294966144  ;;  %v300_v0 = vmov 0.0   ;;  %v54_v1 = vld [vmem:[#allocation7 + $0x8] sm:$0xff]  ;;  %v56_v2 = vld [vmem:[#allocation7 + $0x18] sm:$0xff]  ;;  %vm61_vm0 = vcmask 261120  }
  0x37   :  { %129 = vmatprep.mubr.f32.mxu0 %v300_v0  ;;  %v53_v3 = vld [vmem:[#allocation7] sm:$0xff]  ;;  %v180_v4 = vpack.c.bf16 %v56_v2, %v54_v1  ;;  %v55_v5 = vld [vmem:[#allocation7 + $0x10] sm:$0xff]  ;;  %v58_v6 = vld [vmem:[#allocation7 + $0x28] sm:$0xff]  ;;  %s301_s2 = smov [#allocation8]  }
  0x38   :  { %v60_v7 = vld [vmem:[#allocation7 + $0x38] sm:$0xff]  ;;  %v182_v8 = vpack.c.bf16 %v55_v5, %v53_v3  ;;  %v57_v10 = vld [vmem:[#allocation7 + $0x20] sm:$0xff]  ;;  %v59_v11 = vld [vmem:[#allocation7 + $0x30] sm:$0xff]  ;;  %s169_s21 = sshll.u32 %s301_s2, 4  ;;  %s170_s21 = int_to_ptr.vmem [resolvable:$true] %s169_s21 }
  0x39   :  { %v184_v9 = vpack.c.bf16 %v60_v7, %v58_v6  ;;  %181 = vmatprep.subr.bf16.mxu0 %v180_v4  ;;  %v186_v12 = vpack.c.bf16 %v59_v11, %v57_v10  ;;  %v52_v13 = vld [vmem:[#allocation2] sm:$0xff]  ;;  %v155_v23 = vld [vmem:[#allocation5] sm:$0xff]  ;;  %s267_s22 = scalar_lea.vmem %s170_s21, 128  ;;  %p272_p11 = scmp.lt.s32.totalorder %s170_s21, %s170_s21 }
  0x3a   :  { %183 = vmatpush1.bf16.msra.mxu0 %v182_v8  ;;  %p268_p10 = scmp.ne.s32.totalorder %s170_s21, %s267_s22  ;;  %p273_p12 = scmp.lt.s32.totalorder %s267_s22, %s267_s22 }
  0x3b   :  { %185 = vmatprep.subr.bf16.mxu0 %v184_v9 }
  0x3c   :  { %p274_p13 = por %p273_p12, %p272_p11 }
  0x3e   :  { %187 = vmatpush1.bf16.msra.mxu0 %v186_v12  ;;  %p275_p0 = pnand %p274_p13, %p268_p10 }
  0x41   :  { %179 = vmatmul.mubr.msk.f32.vlgmr.msra.gmra.mrb[0].mxu0 %vm61_vm0, %v52_v13 }
 0x114   :  { %v131_v14 = vpop.f32.mrb[0].mxu0 }
 0x115   :  { %v133_v15 = vpop.f32.mrb[1].mxu0  ;;  %v156_v27 = vsub.f32 %v155_v23, %v131_v14 }
 0x116   :  { %v136_v16 = vmul.f32 1.442695, %v133_v15  ;;  %vm138_vm2 = vcmp.gt.f32.partialorder %v133_v15, 30.0 }
 0x117   :  { %v157_v32 = vmul.f32 %v156_v27, %v156_v27 }
 0x118   :  { %195 = vpow2.f32 %v136_v16 }
 0x122   :  { %v196_v17 = vpop.eup %195 }
 0x123   :  { %v139_v18 = vadd.f32 1.0, %v196_v17  ;;  %v149_v19 = vmin.f32 %v196_v17, 3e+38  ;;  %v142_v21 = vmul.f32 -0.5, %v196_v17  ;;  %v145_v26 = vand.u32 2147483647, %v196_v17 }
 0x125   :  { %197 = vlog2.f32 %v139_v18  ;;  %v150_v20 = vadd.f32 1.0, %v149_v19  ;;  %v143_v24 = vadd.f32 1.0, %v142_v21  ;;  %vm146_vm1 = vcmp.lt.f32.partialorder %v145_v26, 0.0004427343 }
 0x127   :  { %199 = vrcp.f32 %v150_v20  ;;  %v144_v30 = vmul.f32 %v196_v17, %v143_v24 }
 0x12f   :  { %v198_v22 = vpop.eup %197 }
 0x130   :  { %v141_v28 = vmul.f32 0.6931472, %v198_v22 }
 0x131   :  { %v200_v25 = vpop.eup %199 }
 0x132   :  { %v152_v29 = vmul.f32 %v200_v25, %v150_v20  ;;  %v147_v33 = vsel %vm146_vm1, %v144_v30, %v141_v28 }
 0x133   :  { %v148_v36 = vsel %vm138_vm2, %v133_v15, %v147_v33 }
 0x134   :  { %v153_v31 = vsub.f32 2.0, %v152_v29 }
 0x136   :  { %v154_v34 = vmul.f32 %v200_v25, %v153_v31 }
 0x138   :  { %v158_v35 = vmul.f32 %v157_v32, %v154_v34 }
 0x13a   :  { %v159_v37 = vadd.f32 %v158_v35, %v148_v36 }
 0x13c   :  { %v160_v38 = vadd.f32 1.837877, %v159_v37 }
 0x13e   :  { %v161_v39 = vmul.f32 -0.5, %v160_v38 }
 0x140   :  { %162 = vst [vmem:[#allocation8] sm:$0xff] %v161_v39 }
 0x141   :  { %278 = shalt.err (!%p275_p0)
}
 0x142   :  { %s279_s25 = scalar_lea.hbm %s373_s3, 128 }
 0x143   :  { %p280_p1 = scmp.ne.s32.totalorder %s373_s3, %s279_s25  ;;  %p283_p2 = scmp.lt.u32.totalorder %s279_s25, %s373_s3 }
 0x145   :  { %p285_p3 = pnand %p283_p2, %p280_p1 }
 0x147   :  { %288 = shalt.err (!%p285_p3)
}
 0x148   :  { %172 = dma.vmem_to_hbm [thread:$0]  %s170_s21, 128, %s373_s3, [#allocation4]  }
 0x149   :  { %293 = dma.done.wait [#allocation4], 128  }
 0x14a   :  { %294 = vsyncadd [#allocation4], 4294967168 }
 0x14b   :  { %176 = vsyncpa [#allocation3], 1 }
 0x14c   :  { %177 = vsyncpa [#allocation6], 1 }
 0x14d   :  { %178 = vsyncpa [#allocation4], 1 }

</bundles_post_ra>
